<compile_context>
chip_gen: v7x
topology: tpu7x:2x2x1
jax: 0.10.0
libtpu: 0.0.40
codegen_flags: <defaults>
</compile_context>

<pallas_src>
import jax
import jax.numpy as jnp
from jax.experimental import pallas as pl
from jax.experimental.pallas import tpu as pltpu


def _round_up(n, m):
    return ((n + m - 1) // m) * m


def agent_mlp_kernel(xT_ref, w1_ref, b1_ref, w2_ref, b2_ref, w3_ref, b3_ref, oT_ref):
    # Feature-major: a_k = relu(W_k @ a_{k-1} + b_k), shapes (H_k, TB).
    # bf16 operands, f32 MXU accumulation.
    a = jnp.dot(w1_ref[...], xT_ref[...], preferred_element_type=jnp.float32)
    a = jnp.maximum(a + b1_ref[...], 0.0).astype(jnp.bfloat16)
    a = jnp.dot(w2_ref[...], a, preferred_element_type=jnp.float32)
    a = jnp.maximum(a + b2_ref[...], 0.0).astype(jnp.bfloat16)
    q = jnp.dot(w3_ref[...], a, preferred_element_type=jnp.float32)
    # (A8, TB) f32 store: lane-dense (TB multiple of 128), only 8 sublanes wide.
    oT_ref[...] = q + b3_ref[...]


def agent_forward(x, params, action_space, *, tb=1024):
    """Runs Agent.forward as one Pallas kernel, tiled over the batch dimension.

    params: (w1, b1, w2, b2, w3, b3); weights [out, in] bf16 with out-dims
    zero-padded to (128, 512, A8), biases (out, 1) f32.
    Returns (B, action_space) float32.
    """
    w1, b1, w2, b2, w3, b3 = params
    B, S = x.shape
    H1 = w1.shape[0]   # 128
    H2 = w2.shape[0]   # 512
    A8 = w3.shape[0]   # action_space rounded up to 8
    assert w1.shape[1] == S, "state_space mismatch between x and params"

    # Batch tile (lane axis of every operand): multiple of 128; multiple of 256
    # once B >= 256 (MXU fill on v6e/v7x); capped at tb (power of two, default
    # 1024) to amortize per-grid-step overhead on large batches.
    if B <= 128:
        TB = 128
    else:
        TB = min(tb, _round_up(B, 256))
    Bp = _round_up(B, TB)

    xT = x.astype(jnp.bfloat16).T                      # (S, B)
    if Bp != B:
        xT = jnp.pad(xT, ((0, 0), (0, Bp - B)))        # (S, Bp)

    grid = (Bp // TB,)

    # Weights / biases: full-array blocks with constant block index -> DMA'd
    # once, VMEM-resident across all grid steps.
    w_spec = lambda arr: pl.BlockSpec(arr.shape, lambda i: (0, 0))

    flops = 2 * Bp * (S * H1 + H1 * H2 + H2 * A8)
    bytes_accessed = (
        xT.size * 2
        + (w1.size + w2.size + w3.size) * 2
        + (b1.size + b2.size + b3.size) * 4
        + A8 * Bp * 4
    )

    outT = pl.pallas_call(
        agent_mlp_kernel,
        out_shape=jax.ShapeDtypeStruct((A8, Bp), jnp.float32),
        grid=grid,
        in_specs=[
            pl.BlockSpec((S, TB), lambda i: (0, i)),   # x^T batch tile
            w_spec(w1), w_spec(b1),
            w_spec(w2), w_spec(b2),
            w_spec(w3), w_spec(b3),
        ],
        out_specs=pl.BlockSpec((A8, TB), lambda i: (0, i)),
        compiler_params=pltpu.CompilerParams(
            dimension_semantics=("parallel",),
        ),
        cost_estimate=pl.CostEstimate(
            flops=flops, transcendentals=0, bytes_accessed=bytes_accessed
        ),
    )(xT, w1, b1, w2, b2, w3, b3)

    # Slice off padded action rows / padded batch columns; back to batch-major.
    return outT[:action_space, :B].T


def init_agent_params(key, state_space, action_space):
    """Deterministic init mimicking nn.Linear U(-1/sqrt(fan_in), 1/sqrt(fan_in)).

    Weights are stored [out, in] (PyTorch layout) in bf16 with out-dims padded
    to (128, 512, round_up(action_space, 8)); padded entries are zero so the
    forward pass is exact after slicing.  Biases are (out, 1) f32.
    """
    a8 = _round_up(action_space, 8)
    dims = [(state_space, 100), (100, 500), (500, action_space)]
    pads = [(state_space, 128), (128, 512), (512, a8)]
    params = []
    for i, ((fin, fout), (pin, pout)) in enumerate(zip(dims, pads)):
        kw, kb = jax.random.split(jax.random.fold_in(key, i))
        bound = 1.0 / (float(fin) ** 0.5)
        w = jax.random.uniform(kw, (fout, fin), jnp.float32, -bound, bound)
        b = jax.random.uniform(kb, (fout, 1), jnp.float32, -bound, bound)
        wp = jnp.zeros((pout, pin), jnp.float32).at[:fout, :fin].set(w)
        bp = jnp.zeros((pout, 1), jnp.float32).at[:fout, :].set(b)
        params += [wp.astype(jnp.bfloat16), bp]
    return tuple(params)


def agent_forward_ref(x, params, action_space):
    """Pure-JAX reference mirroring the kernel's dtype casts (bf16 weights/acts,
    f32 accumulation).  NOTE: bf16 weights deviate ~1e-2 rel. from a float32
    PyTorch nn.Linear; keep weights f32 if bit-closer parity is required."""
    w1, b1, w2, b2, w3, b3 = params
    a = x.astype(jnp.bfloat16)
    a = jnp.maximum(jnp.dot(a, w1.T, preferred_element_type=jnp.float32) + b1.T, 0.0)
    a = a.astype(jnp.bfloat16)
    a = jnp.maximum(jnp.dot(a, w2.T, preferred_element_type=jnp.float32) + b2.T, 0.0)
    a = a.astype(jnp.bfloat16)
    q = jnp.dot(a, w3.T, preferred_element_type=jnp.float32) + b3.T
    return q[:, :action_space]


if __name__ == "__main__":
    key = jax.random.PRNGKey(0)
    state_space, action_space = 32, 4
    kx, kp, kx2 = jax.random.split(key, 3)
    params = init_agent_params(kp, state_space, action_space)

    # Small-batch check (single grid step).
    B = 8
    x = jax.random.normal(kx, (B, state_space), jnp.float32)
    out = jax.block_until_ready(agent_forward(x, params, action_space))
    ref = agent_forward_ref(x, params, action_space)
    assert out.shape == (B, action_space)
    assert jnp.allclose(out, ref, atol=2e-3, rtol=2e-3), float(
        jnp.max(jnp.abs(out - ref))
    )

    # Multi-step-grid check (exercises batch tiling / padding path).
    B2 = 2500
    x2 = jax.random.normal(kx2, (B2, state_space), jnp.float32)
    out2 = jax.block_until_ready(agent_forward(x2, params, action_space))
    ref2 = agent_forward_ref(x2, params, action_space)
    assert out2.shape == (B2, action_space)
    assert jnp.allclose(out2, ref2, atol=2e-3, rtol=2e-3), float(
        jnp.max(jnp.abs(out2 - ref2))
    )

    print("KERNEL_OK")
</pallas_src>

<mosaic_0001>
module attributes {stable_mosaic.version = 11 : i64} {
  func.func @agent_mlp_kernel(%arg0: i32, %arg1: memref<32x128xbf16, #tpu.memory_space<vmem>>, %arg2: memref<128x32xbf16, #tpu.memory_space<vmem>>, %arg3: memref<128x1xf32, #tpu.memory_space<vmem>>, %arg4: memref<512x128xbf16, #tpu.memory_space<vmem>>, %arg5: memref<512x1xf32, #tpu.memory_space<vmem>>, %arg6: memref<8x512xbf16, #tpu.memory_space<vmem>>, %arg7: memref<8x1xf32, #tpu.memory_space<vmem>>, %arg8: memref<8x128xf32, #tpu.memory_space<vmem>>) attributes {dimension_semantics = [#tpu.dimension_semantics<parallel>], iteration_bounds = array<i64: 1>, scalar_prefetch = 0 : i64, scratch_operands = 0 : i64, tpu.core_type = #tpu.core_type<tc>, window_params = [{transform_indices = @transform_0, window_bounds = array<i64: 32, 128>}, {pipeline_mode = #tpu.pipeline_mode<synchronous>, transform_indices = @transform_1, window_bounds = array<i64: 128, 32>}, {pipeline_mode = #tpu.pipeline_mode<synchronous>, transform_indices = @transform_2, window_bounds = array<i64: 128, 1>}, {pipeline_mode = #tpu.pipeline_mode<synchronous>, transform_indices = @transform_3, window_bounds = array<i64: 512, 128>}, {pipeline_mode = #tpu.pipeline_mode<synchronous>, transform_indices = @transform_4, window_bounds = array<i64: 512, 1>}, {pipeline_mode = #tpu.pipeline_mode<synchronous>, transform_indices = @transform_5, window_bounds = array<i64: 8, 512>}, {pipeline_mode = #tpu.pipeline_mode<synchronous>, transform_indices = @transform_6, window_bounds = array<i64: 8, 1>}, {transform_indices = @transform_7, window_bounds = array<i64: 8, 128>}]} {
    %c0 = arith.constant 0 : index
    %c0_0 = arith.constant 0 : index
    %0 = vector.load %arg2[%c0, %c0_0] : memref<128x32xbf16, #tpu.memory_space<vmem>>, vector<128x32xbf16>
    %c0_1 = arith.constant 0 : index
    %c0_2 = arith.constant 0 : index
    %1 = vector.load %arg1[%c0_1, %c0_2] : memref<32x128xbf16, #tpu.memory_space<vmem>>, vector<32x128xbf16>
    %cst = arith.constant dense<0.000000e+00> : vector<128x128xf32>
    %2 = tpu.matmul %0, %1, %cst {dimension_numbers = #tpu.dot_dimension_numbers<[1], [0], [0], [1], [0, 0, 1, 1], [], []>} : vector<128x32xbf16>, vector<32x128xbf16>, vector<128x128xf32> -> vector<128x128xf32>
    %c0_3 = arith.constant 0 : index
    %c0_4 = arith.constant 0 : index
    %3 = vector.load %arg3[%c0_3, %c0_4] : memref<128x1xf32, #tpu.memory_space<vmem>>, vector<128x1xf32>
    %4 = vector.broadcast %3 : vector<128x1xf32> to vector<128x128xf32>
    %5 = arith.addf %2, %4 : vector<128x128xf32>
    %cst_5 = arith.constant 0.000000e+00 : f32
    %6 = vector.broadcast %cst_5 : f32 to vector<128x128xf32>
    %7 = arith.maximumf %5, %6 : vector<128x128xf32>
    %8 = arith.truncf %7 : vector<128x128xf32> to vector<128x128xbf16>
    %c0_6 = arith.constant 0 : index
    %c0_7 = arith.constant 0 : index
    %9 = vector.load %arg4[%c0_6, %c0_7] : memref<512x128xbf16, #tpu.memory_space<vmem>>, vector<512x128xbf16>
    %cst_8 = arith.constant dense<0.000000e+00> : vector<512x128xf32>
    %10 = tpu.matmul %9, %8, %cst_8 {dimension_numbers = #tpu.dot_dimension_numbers<[1], [0], [0], [1], [0, 0, 1, 1], [], []>} : vector<512x128xbf16>, vector<128x128xbf16>, vector<512x128xf32> -> vector<512x128xf32>
    %c0_9 = arith.constant 0 : index
    %c0_10 = arith.constant 0 : index
    %11 = vector.load %arg5[%c0_9, %c0_10] : memref<512x1xf32, #tpu.memory_space<vmem>>, vector<512x1xf32>
    %12 = vector.broadcast %11 : vector<512x1xf32> to vector<512x128xf32>
    %13 = arith.addf %10, %12 : vector<512x128xf32>
    %cst_11 = arith.constant 0.000000e+00 : f32
    %14 = vector.broadcast %cst_11 : f32 to vector<512x128xf32>
    %15 = arith.maximumf %13, %14 : vector<512x128xf32>
    %16 = arith.truncf %15 : vector<512x128xf32> to vector<512x128xbf16>
    %c0_12 = arith.constant 0 : index
    %c0_13 = arith.constant 0 : index
    %17 = vector.load %arg6[%c0_12, %c0_13] : memref<8x512xbf16, #tpu.memory_space<vmem>>, vector<8x512xbf16>
    %cst_14 = arith.constant dense<0.000000e+00> : vector<8x128xf32>
    %18 = tpu.matmul %17, %16, %cst_14 {dimension_numbers = #tpu.dot_dimension_numbers<[1], [0], [0], [1], [0, 0, 1, 1], [], []>} : vector<8x512xbf16>, vector<512x128xbf16>, vector<8x128xf32> -> vector<8x128xf32>
    %c0_15 = arith.constant 0 : index
    %c0_16 = arith.constant 0 : index
    %19 = vector.load %arg7[%c0_15, %c0_16] : memref<8x1xf32, #tpu.memory_space<vmem>>, vector<8x1xf32>
    %20 = vector.broadcast %19 : vector<8x1xf32> to vector<8x128xf32>
    %21 = arith.addf %18, %20 : vector<8x128xf32>
    %c0_17 = arith.constant 0 : index
    %c0_18 = arith.constant 0 : index
    %22 = vector.load %arg8[%c0_17, %c0_18] : memref<8x128xf32, #tpu.memory_space<vmem>>, vector<8x128xf32>
    tpu.vector_store %arg8[%c0_17, %c0_18], %21 {strides = array<i32>} : memref<8x128xf32, #tpu.memory_space<vmem>>, vector<8x128xf32>,
    return
  }
  func.func @transform_0(%arg0: i32) -> (i32, i32) {
    %c0_i32 = arith.constant 0 : i32
    %c0_i32_0 = arith.constant 0 : i32
    return %c0_i32, %arg0 : i32, i32
  }
  func.func @transform_1(%arg0: i32) -> (i32, i32) {
    %c0_i32 = arith.constant 0 : i32
    %c0_i32_0 = arith.constant 0 : i32
    %c0_i32_1 = arith.constant 0 : i32
    return %c0_i32, %c0_i32_0 : i32, i32
  }
  func.func @transform_2(%arg0: i32) -> (i32, i32) {
    %c0_i32 = arith.constant 0 : i32
    %c0_i32_0 = arith.constant 0 : i32
    %c0_i32_1 = arith.constant 0 : i32
    return %c0_i32, %c0_i32_0 : i32, i32
  }
  func.func @transform_3(%arg0: i32) -> (i32, i32) {
    %c0_i32 = arith.constant 0 : i32
    %c0_i32_0 = arith.constant 0 : i32
    %c0_i32_1 = arith.constant 0 : i32
    return %c0_i32, %c0_i32_0 : i32, i32
  }
  func.func @transform_4(%arg0: i32) -> (i32, i32) {
    %c0_i32 = arith.constant 0 : i32
    %c0_i32_0 = arith.constant 0 : i32
    %c0_i32_1 = arith.constant 0 : i32
    return %c0_i32, %c0_i32_0 : i32, i32
  }
  func.func @transform_5(%arg0: i32) -> (i32, i32) {
    %c0_i32 = arith.constant 0 : i32
    %c0_i32_0 = arith.constant 0 : i32
    %c0_i32_1 = arith.constant 0 : i32
    return %c0_i32, %c0_i32_0 : i32, i32
  }
  func.func @transform_6(%arg0: i32) -> (i32, i32) {
    %c0_i32 = arith.constant 0 : i32
    %c0_i32_0 = arith.constant 0 : i32
    %c0_i32_1 = arith.constant 0 : i32
    return %c0_i32, %c0_i32_0 : i32, i32
  }
  func.func @transform_7(%arg0: i32) -> (i32, i32) {
    %c0_i32 = arith.constant 0 : i32
    %c0_i32_0 = arith.constant 0 : i32
    return %c0_i32, %arg0 : i32, i32
  }
}

</mosaic_0001>

<bundles_post_ra>
// kernel: tpu_custom_call.1
= control target key start
LH: loop header
LB: loop body
LE: loop exit
PB: predicated region body
PF: predicated region fallthrough
CT: control target
= control target key end

     0   :  { %v1822_v2 = vmov 0   ;;  %vm196_vm0 = vcmask 261120   ;;  %s2490_s0 = inlined_call_operand.vmem [shape: bf16[32,128], index: 0, kind: input, shape index: {}]   ;;  %s2491_s1 = inlined_call_operand.vmem [shape: bf16[128,32], index: 1, kind: input, shape index: {}]   ;;  %s2492_s2 = inlined_call_operand.vmem [shape: f32[128,1], index: 2, kind: input, shape index: {}]   ;;  %s2493_s3 = inlined_call_operand.vmem [shape: bf16[512,128], index: 3, kind: input, shape index: {}]   ;;  %s2494_s4 = inlined_call_operand.vmem [shape: f32[512,1], index: 4, kind: input, shape index: {}]   ;;  %s2495_s5 = inlined_call_operand.vmem [shape: bf16[8,512], index: 5, kind: input, shape index: {}]   ;;  %s2496_s6 = inlined_call_operand.vmem [shape: f32[8,1], index: 6, kind: input, shape index: {}]   ;;  %s2497_s7 = inlined_call_operand.hbm [shape: f32[8,128], index: 7, kind: output, shape index: {}]  }
   0x1   :  { %v50_v0 = vld [vmem:[%s2492_s2 + $0x10] sm:$0xff]  ;;  %v48_v1 = vld [vmem:[%s2492_s2] sm:$0xff]  ;;  %1751 = vset.pattern.permute.xlu1 %v1822_v2  ;;  %1750 = vset.pattern.permute.xlu0 %v1822_v2  ;;  %v51_v4 = vld [vmem:[%s2492_s2 + $0x18] sm:$0xff] }
   0x2   :  { %v1752_v3 = vld [vmem:[%s2490_s0] sm:$0xff]   ;;  %76 = vperm.xlu1 %1751, %v50_v0   ;;  %66 = vperm.xlu0 %1750, %v48_v1   ;;  %v49_v5 = vld [vmem:[%s2492_s2 + $0x8] sm:$0xff]  ;;  %v1756_v11 = vld [vmem:[%s2491_s1 + $0x10] sm:$0xff]  }
   0x3   :  { %1632 = vmatprep.subr.bf16.mxu0 %v1752_v3  ;;  %v1753_v6 = vld [vmem:[%s2490_s0 + $0x8] sm:$0xff]   ;;  %v1754_v7 = vld [vmem:[%s2491_s1] sm:$0xff]   ;;  %v55_v12 = vld [vmem:[%s2492_s2 + $0x38] sm:$0xff] }
   0x4   :  { %1633 = vmatpush3.bf16.msra.mxu0 %v1752_v3  ;;  %v53_v8 = vld [vmem:[%s2492_s2 + $0x28] sm:$0xff]  ;;  %v52_v9 = vld [vmem:[%s2492_s2 + $0x20] sm:$0xff]  ;;  %1636 = vmatprep.mubr.msk.bf16.mxu0 %vm196_vm0, %v1754_v7  ;;  %v54_v13 = vld [vmem:[%s2492_s2 + $0x30] sm:$0xff] }
   0x5   :  { %1634 = vmatprep.subr.bf16.mxu0 %v1753_v6  ;;  %v1755_v10 = vld [vmem:[%s2491_s1 + $0x8] sm:$0xff]   ;;  %v56_v15 = vld [vmem:[%s2492_s2 + $0x40] sm:$0xff]  ;;  %v1757_v16 = vld [vmem:[%s2491_s1 + $0x18] sm:$0xff]  }
   0x6   :  { %81 = vperm.xlu1 %1751, %v51_v4   ;;  %71 = vperm.xlu0 %1750, %v49_v5   ;;  %v57_v14 = vld [vmem:[%s2492_s2 + $0x48] sm:$0xff]  ;;  %v1758_v17 = vld [vmem:[%s2491_s1 + $0x20] sm:$0xff]   ;;  %v59_v18 = vld [vmem:[%s2492_s2 + $0x58] sm:$0xff] }
   0x7   :  { %v58_v19 = vld [vmem:[%s2492_s2 + $0x50] sm:$0xff]  ;;  %v61_v20 = vld [vmem:[%s2492_s2 + $0x68] sm:$0xff]  ;;  %v60_v21 = vld [vmem:[%s2492_s2 + $0x60] sm:$0xff] }
   0x8   :  { %1635 = vmatpush3.bf16.msra.mxu0 %v1753_v6  ;;  %v1759_v22 = vld [vmem:[%s2491_s1 + $0x28] sm:$0xff]   ;;  %v1760_v23 = vld [vmem:[%s2491_s1 + $0x30] sm:$0xff]   ;;  %v63_v24 = vld [vmem:[%s2492_s2 + $0x78] sm:$0xff] }
   0x9   :  { %v62_v25 = vld [vmem:[%s2492_s2 + $0x70] sm:$0xff]  ;;  %v423_v26 = vld [vmem:[%s2494_s4 + $0x88] sm:$0xff]  ;;  %v422_v27 = vld [vmem:[%s2494_s4 + $0x80] sm:$0xff] }
   0xa   :  { %91 = vperm.xlu1 %1751, %v53_v8   ;;  %86 = vperm.xlu0 %1750, %v52_v9   ;;  %v1761_v28 = vld [vmem:[%s2491_s1 + $0x38] sm:$0xff]   ;;  %v407_v29 = vld [vmem:[%s2494_s4 + $0x8] sm:$0xff]  ;;  %v406_v30 = vld [vmem:[%s2494_s4] sm:$0xff] }
   0xb   :  { %1637 = vmatmul.mubr.msk.bf16.vlgmr.msra.gmra.mrb[0].mxu0 %vm196_vm0, %v1755_v10  ;;  %v425_v31 = vld [vmem:[%s2494_s4 + $0x98] sm:$0xff]  ;;  %v424_v32 = vld [vmem:[%s2494_s4 + $0x90] sm:$0xff]  ;;  %v427_v35 = vld [vmem:[%s2494_s4 + $0xa8] sm:$0xff] }
   0xc   :  { %1640 = vmatprep.mubr.msk.bf16.mxu0 %vm196_vm0, %v1756_v11  ;;  %v409_v33 = vld [vmem:[%s2494_s4 + $0x18] sm:$0xff]  ;;  %v408_v34 = vld [vmem:[%s2494_s4 + $0x10] sm:$0xff]  ;;  %v426_v36 = vld [vmem:[%s2494_s4 + $0xa0] sm:$0xff] }
   0xd   :  { %v411_v37 = vld [vmem:[%s2494_s4 + $0x28] sm:$0xff]  ;;  %v410_v38 = vld [vmem:[%s2494_s4 + $0x20] sm:$0xff]  ;;  %v429_v39 = vld [vmem:[%s2494_s4 + $0xb8] sm:$0xff] }
   0xe   :  { %101 = vperm.xlu1 %1751, %v55_v12   ;;  %96 = vperm.xlu0 %1750, %v54_v13   ;;  %v428_v40 = vld [vmem:[%s2494_s4 + $0xb0] sm:$0xff] }
  0x12   :  { %111 = vperm.xlu1 %1751, %v57_v14   ;;  %106 = vperm.xlu0 %1750, %v56_v15  }
  0x13   :  { %1641 = vmatmul.mubr.msk.bf16.gmra.mrb[4].mxu0 %vm196_vm0, %v1757_v16 }
  0x14   :  { %1644 = vmatprep.mubr.msk.bf16.mxu0 %vm196_vm0, %v1758_v17 }
  0x16   :  { %121 = vperm.xlu1 %1751, %v59_v18   ;;  %116 = vperm.xlu0 %1750, %v58_v19  }
  0x1a   :  { %131 = vperm.xlu1 %1751, %v61_v20   ;;  %126 = vperm.xlu0 %1750, %v60_v21  }
  0x1b   :  { %1645 = vmatmul.mubr.msk.bf16.gmra.mrb[8].mxu0 %vm196_vm0, %v1759_v22 }
  0x1c   :  { %1648 = vmatprep.mubr.msk.bf16.mxu0 %vm196_vm0, %v1760_v23 }
  0x1e   :  { %141 = vperm.xlu1 %1751, %v63_v24   ;;  %136 = vperm.xlu0 %1750, %v62_v25  }
  0x22   :  { %557 = vperm.xlu1 %1751, %v423_v26   ;;  %552 = vperm.xlu0 %1750, %v422_v27  }
  0x23   :  { %1649 = vmatmul.mubr.msk.bf16.gmra.mrb[12].mxu0 %vm196_vm0, %v1761_v28 }
  0x26   :  { %477 = vperm.xlu1 %1751, %v407_v29   ;;  %472 = vperm.xlu0 %1750, %v406_v30  }
  0x2a   :  { %567 = vperm.xlu1 %1751, %v425_v31   ;;  %562 = vperm.xlu0 %1750, %v424_v32  }
  0x2e   :  { %487 = vperm.xlu1 %1751, %v409_v33   ;;  %482 = vperm.xlu0 %1750, %v408_v34  }
  0x32   :  { %577 = vperm.xlu1 %1751, %v427_v35   ;;  %572 = vperm.xlu0 %1750, %v426_v36  }
  0x36   :  { %497 = vperm.xlu1 %1751, %v411_v37   ;;  %492 = vperm.xlu0 %1750, %v410_v38  }
  0x3a   :  { %587 = vperm.xlu1 %1751, %v429_v39   ;;  %582 = vperm.xlu0 %1750, %v428_v40  }
  0x3b   :  { %12 = vsyncpa [#allocation3], 0  ;;  %v413_v41 = vld [vmem:[%s2494_s4 + $0x38] sm:$0xff]  ;;  %v412_v42 = vld [vmem:[%s2494_s4 + $0x30] sm:$0xff] }
  0x3c   :  { %v431_v43 = vld [vmem:[%s2494_s4 + $0xc8] sm:$0xff]  ;;  %v430_v44 = vld [vmem:[%s2494_s4 + $0xc0] sm:$0xff]  ;;  %v433_v47 = vld [vmem:[%s2494_s4 + $0xd8] sm:$0xff] }
  0x3d   :  { %v415_v45 = vld [vmem:[%s2494_s4 + $0x48] sm:$0xff]  ;;  %v414_v46 = vld [vmem:[%s2494_s4 + $0x40] sm:$0xff]  ;;  %v432_v48 = vld [vmem:[%s2494_s4 + $0xd0] sm:$0xff] }
  0x3e   :  { %507 = vperm.xlu1 %1751, %v413_v41   ;;  %502 = vperm.xlu0 %1750, %v412_v42   ;;  %v417_v49 = vld [vmem:[%s2494_s4 + $0x58] sm:$0xff]  ;;  %v416_v50 = vld [vmem:[%s2494_s4 + $0x50] sm:$0xff]  ;;  %v435_v51 = vld [vmem:[%s2494_s4 + $0xe8] sm:$0xff] }
  0x3f   :  { %v434_v52 = vld [vmem:[%s2494_s4 + $0xe0] sm:$0xff]  ;;  %v419_v53 = vld [vmem:[%s2494_s4 + $0x68] sm:$0xff]  ;;  %v437_v55 = vld [vmem:[%s2494_s4 + $0xf8] sm:$0xff] }
  0x40   :  { %v418_v54 = vld [vmem:[%s2494_s4 + $0x60] sm:$0xff]  ;;  %v436_v56 = vld [vmem:[%s2494_s4 + $0xf0] sm:$0xff]  ;;  %v421_v57 = vld [vmem:[%s2494_s4 + $0x78] sm:$0xff] }
  0x41   :  { %v420_v58 = vld [vmem:[%s2494_s4 + $0x70] sm:$0xff]  ;;  %v455_v59 = vld [vmem:[%s2494_s4 + $0x188] sm:$0xff]  ;;  %v454_v60 = vld [vmem:[%s2494_s4 + $0x180] sm:$0xff] }
  0x42   :  { %597 = vperm.xlu1 %1751, %v431_v43   ;;  %592 = vperm.xlu0 %1750, %v430_v44   ;;  %v439_v61 = vld [vmem:[%s2494_s4 + $0x108] sm:$0xff]  ;;  %v438_v62 = vld [vmem:[%s2494_s4 + $0x100] sm:$0xff]  ;;  %v457_v63 = vld [vmem:[%s2494_s4 + $0x198] sm:$0xff] }
  0x43   :  { %v456_v0 = vld [vmem:[%s2494_s4 + $0x190] sm:$0xff]  ;;  %v441_v1 = vld [vmem:[%s2494_s4 + $0x118] sm:$0xff]  ;;  %v459_v3 = vld [vmem:[%s2494_s4 + $0x1a8] sm:$0xff] }
  0x44   :  { %v440_v2 = vld [vmem:[%s2494_s4 + $0x110] sm:$0xff]  ;;  %v458_v4 = vld [vmem:[%s2494_s4 + $0x1a0] sm:$0xff]  ;;  %v443_v5 = vld [vmem:[%s2494_s4 + $0x128] sm:$0xff] }
  0x45   :  { %v442_v6 = vld [vmem:[%s2494_s4 + $0x120] sm:$0xff]  ;;  %v461_v7 = vld [vmem:[%s2494_s4 + $0x1b8] sm:$0xff]  ;;  %v460_v8 = vld [vmem:[%s2494_s4 + $0x1b0] sm:$0xff] }
  0x46   :  { %517 = vperm.xlu1 %1751, %v415_v45   ;;  %512 = vperm.xlu0 %1750, %v414_v46   ;;  %v445_v9 = vld [vmem:[%s2494_s4 + $0x138] sm:$0xff]  ;;  %v444_v10 = vld [vmem:[%s2494_s4 + $0x130] sm:$0xff]  ;;  %v463_v11 = vld [vmem:[%s2494_s4 + $0x1c8] sm:$0xff] }
  0x47   :  { %v462_v12 = vld [vmem:[%s2494_s4 + $0x1c0] sm:$0xff]  ;;  %v447_v13 = vld [vmem:[%s2494_s4 + $0x148] sm:$0xff]  ;;  %v1763_v16 = vld [vmem:[%s2493_s3 + $0x50] sm:$0xff]  }
  0x48   :  { %v446_v14 = vld [vmem:[%s2494_s4 + $0x140] sm:$0xff]  ;;  %v465_v17 = vld [vmem:[%s2494_s4 + $0x1d8] sm:$0xff]  ;;  %v464_v18 = vld [vmem:[%s2494_s4 + $0x1d0] sm:$0xff]  ;;  %1688 = vmatprep.mubr.bf16.mxu1 %v1763_v16 }
  0x49   :  { %v1762_v15 = vld [vmem:[%s2493_s3] sm:$0xff]   ;;  %v449_v19 = vld [vmem:[%s2494_s4 + $0x158] sm:$0xff]  ;;  %v448_v20 = vld [vmem:[%s2494_s4 + $0x150] sm:$0xff] }
  0x4a   :  { %607 = vperm.xlu1 %1751, %v433_v47   ;;  %602 = vperm.xlu0 %1750, %v432_v48   ;;  %v467_v21 = vld [vmem:[%s2494_s4 + $0x1e8] sm:$0xff]  ;;  %v466_v22 = vld [vmem:[%s2494_s4 + $0x1e0] sm:$0xff]  ;;  %v469_v25 = vld [vmem:[%s2494_s4 + $0x1f8] sm:$0xff] }
  0x4b   :  { %1668 = vmatprep.mubr.bf16.mxu0 %v1762_v15  ;;  %v451_v23 = vld [vmem:[%s2494_s4 + $0x168] sm:$0xff]  ;;  %v450_v24 = vld [vmem:[%s2494_s4 + $0x160] sm:$0xff]  ;;  %v468_v26 = vld [vmem:[%s2494_s4 + $0x1f0] sm:$0xff] }
  0x4c   :  { %v453_v27 = vld [vmem:[%s2494_s4 + $0x178] sm:$0xff]  ;;  %v452_v28 = vld [vmem:[%s2494_s4 + $0x170] sm:$0xff]  ;;  %v1369_v29 = vld [vmem:[%s2496_s6] sm:$0xff] }
  0x4e   :  { %527 = vperm.xlu1 %1751, %v417_v49   ;;  %522 = vperm.xlu0 %1750, %v416_v50  }
  0x52   :  { %617 = vperm.xlu1 %1751, %v435_v51   ;;  %612 = vperm.xlu0 %1750, %v434_v52  }
  0x56   :  { %537 = vperm.xlu1 %1751, %v419_v53   ;;  %532 = vperm.xlu0 %1750, %v418_v54  }
  0x5a   :  { %627 = vperm.xlu1 %1751, %v437_v55   ;;  %622 = vperm.xlu0 %1750, %v436_v56  }
  0x5e   :  { %547 = vperm.xlu1 %1751, %v421_v57   ;;  %542 = vperm.xlu0 %1750, %v420_v58  }
  0x62   :  { %717 = vperm.xlu1 %1751, %v455_v59   ;;  %712 = vperm.xlu0 %1750, %v454_v60  }
  0x66   :  { %637 = vperm.xlu1 %1751, %v439_v61   ;;  %632 = vperm.xlu0 %1750, %v438_v62  }
  0x6a   :  { %727 = vperm.xlu1 %1751, %v457_v63   ;;  %722 = vperm.xlu0 %1750, %v456_v0  }
  0x6e   :  { %647 = vperm.xlu1 %1751, %v441_v1   ;;  %642 = vperm.xlu0 %1750, %v440_v2  }
  0x72   :  { %737 = vperm.xlu1 %1751, %v459_v3   ;;  %732 = vperm.xlu0 %1750, %v458_v4  }
  0x76   :  { %657 = vperm.xlu1 %1751, %v443_v5   ;;  %652 = vperm.xlu0 %1750, %v442_v6  }
  0x7a   :  { %747 = vperm.xlu1 %1751, %v461_v7   ;;  %742 = vperm.xlu0 %1750, %v460_v8  }
  0x7e   :  { %667 = vperm.xlu1 %1751, %v445_v9   ;;  %662 = vperm.xlu0 %1750, %v444_v10  }
  0x81   :  { %v67_v30 = vpop.permute.xlu0 %66  ;;  %v77_v31 = vpop.permute.xlu1 %76 }
  0x82   :  { %757 = vperm.xlu1 %1751, %v463_v11   ;;  %752 = vperm.xlu0 %1750, %v462_v12  }
  0x85   :  { %v72_v32 = vpop.permute.xlu0 %71  ;;  %v82_v33 = vpop.permute.xlu1 %81 }
  0x86   :  { %677 = vperm.xlu1 %1751, %v447_v13   ;;  %672 = vperm.xlu0 %1750, %v446_v14  }
  0x89   :  { %v87_v34 = vpop.permute.xlu0 %86  ;;  %v92_v35 = vpop.permute.xlu1 %91 }
  0x8a   :  { %767 = vperm.xlu1 %1751, %v465_v17   ;;  %762 = vperm.xlu0 %1750, %v464_v18  }
  0x8d   :  { %v97_v36 = vpop.permute.xlu0 %96  ;;  %v102_v40 = vpop.permute.xlu1 %101 }
  0x8e   :  { %687 = vperm.xlu1 %1751, %v449_v19   ;;  %682 = vperm.xlu0 %1750, %v448_v20  }
  0x91   :  { %v107_v48 = vpop.permute.xlu0 %106  ;;  %v112_v52 = vpop.permute.xlu1 %111 }
  0x92   :  { %777 = vperm.xlu1 %1751, %v467_v21   ;;  %772 = vperm.xlu0 %1750, %v466_v22  }
  0x95   :  { %v117_v60 = vpop.permute.xlu0 %116  ;;  %v122_v1 = vpop.permute.xlu1 %121 }
  0x96   :  { %697 = vperm.xlu1 %1751, %v451_v23   ;;  %692 = vperm.xlu0 %1750, %v450_v24  }
  0x99   :  { %v127_v9 = vpop.permute.xlu0 %126  ;;  %v132_v13 = vpop.permute.xlu1 %131 }
  0x9a   :  { %787 = vperm.xlu1 %1751, %v469_v25   ;;  %782 = vperm.xlu0 %1750, %v468_v26  }
  0x9d   :  { %v137_v21 = vpop.permute.xlu0 %136  ;;  %v142_v26 = vpop.permute.xlu1 %141 }
  0x9e   :  { %707 = vperm.xlu1 %1751, %v453_v27   ;;  %702 = vperm.xlu0 %1750, %v452_v28  }
  0xa2   :  { %1372 = vperm.xlu0 %1750, %v1369_v29  }
  0xde   :  { %v1638_v37 = vpop.f32.mrb[0].mxu0 }
  0xdf   :  { %v264_v38 = vadd.f32 %v1638_v37, %v77_v31  ;;  %v255_v39 = vpop.f32.mrb[1].mxu0 }
  0xe0   :  { %v1639_v41 = vpop.f32.mrb[2].mxu0  ;;  %v256_v42 = vadd.f32 %v255_v39, %v67_v30  ;;  %v1765_v39 = vld [vmem:[%s2493_s3 + $0x58] sm:$0xff]  }
  0xe1   :  { %v267_v43 = vadd.f32 %v1639_v41, %v82_v33  ;;  %v258_v44 = vpop.f32.mrb[3].mxu0  ;;  %v320_v45 = vmax.f32 %v264_v38, 0.0  ;;  %v1764_v38 = vld [vmem:[%s2493_s3 + $0x8] sm:$0xff]   ;;  %v1767_v41 = vld [vmem:[%s2493_s3 + $0x60] sm:$0xff]  }
  0xe2   :  { %v259_v47 = vadd.f32 %v258_v44, %v72_v32  ;;  %v318_v49 = vmax.f32 %v256_v42, 0.0  ;;  %v1768_v42 = vld [vmem:[%s2493_s3 + $0x18] sm:$0xff]   ;;  %v1770_v44 = vld [vmem:[%s2493_s3 + $0x20] sm:$0xff]  }
  0xe3   :  { %v321_v46 = vmax.f32 %v267_v43, 0.0  ;;  %v1769_v43 = vld [vmem:[%s2493_s3 + $0x68] sm:$0xff]  }
  0xe4   :  { %v319_v51 = vmax.f32 %v259_v47, 0.0  ;;  %v1773_v47 = vld [vmem:[%s2493_s3 + $0x78] sm:$0xff]  }
  0xe5   :  { %v335_v50 = vpack.c.bf16 %v321_v46, %v320_v45  ;;  %v1771_v45 = vld [vmem:[%s2493_s3 + $0x70] sm:$0xff]   ;;  %v1772_v46 = vld [vmem:[%s2493_s3 + $0x28] sm:$0xff]  }
  0xe6   :  { %v1642_v53 = vpop.f32.mrb[4].mxu0  ;;  %v334_v54 = vpack.c.bf16 %v319_v51, %v318_v49  ;;  %v1775_v49 = vld [vmem:[%s2493_s3 + $0x80] sm:$0xff]   ;;  %v1777_v51 = vld [vmem:[%s2493_s3 + $0x88] sm:$0xff]  }
  0xe7   :  { %v280_v55 = vadd.f32 %v1642_v53, %v97_v36  ;;  %v271_v56 = vpop.f32.mrb[5].mxu0  ;;  %v1779_v53 = vld [vmem:[%s2493_s3 + $0x90] sm:$0xff]  }
  0xe8   :  { %v1643_v57 = vpop.f32.mrb[6].mxu0  ;;  %v272_v58 = vadd.f32 %v271_v56, %v87_v34  ;;  %1652 = vmatprep.subr.bf16.mxu0 %v334_v54  ;;  %1732 = vmatprep.subr.bf16.mxu1 %v334_v54  ;;  %v1782_v56 = vld [vmem:[%s2493_s3 + $0xa0] sm:$0xff]  }
  0xe9   :  { %v283_v59 = vadd.f32 %v1643_v57, %v102_v40  ;;  %v274_v61 = vpop.f32.mrb[7].mxu0  ;;  %1653 = vmatpush3.bf16.msra.mxu0 %v334_v54  ;;  %1740 = vmatpush3.bf16.msra.mxu1 %v334_v54  ;;  %v324_v62 = vmax.f32 %v280_v55, 0.0  ;;  %v1766_v40 = vld [vmem:[%s2493_s3 + $0x10] sm:$0xff]   ;;  %v1780_v54 = vld [vmem:[%s2493_s3 + $0x48] sm:$0xff]   ;;  %v1781_v55 = vld [vmem:[%s2493_s3 + $0x98] sm:$0xff]  }
  0xea   :  { %v275_v0 = vadd.f32 %v274_v61, %v92_v35  ;;  %1654 = vmatprep.subr.bf16.mxu0 %v335_v50  ;;  %1733 = vmatprep.subr.bf16.mxu1 %v335_v50  ;;  %v322_v2 = vmax.f32 %v272_v58, 0.0  ;;  %v1783_v57 = vld [vmem:[%s2493_s3 + $0xa8] sm:$0xff]   ;;  %v1784_v58 = vld [vmem:[%s2493_s3 + $0xb0] sm:$0xff]  }
  0xeb   :  { %v325_v63 = vmax.f32 %v283_v59, 0.0  ;;  %v1785_v59 = vld [vmem:[%s2493_s3 + $0xb8] sm:$0xff]   ;;  %v1787_v61 = vld [vmem:[%s2493_s3 + $0xc8] sm:$0xff]  }
  0xec   :  { %v323_v4 = vmax.f32 %v275_v0, 0.0  ;;  %v1790_v0 = vld [vmem:[%s2493_s3 + $0xe0] sm:$0xff]  }
  0xed   :  { %v337_v3 = vpack.c.bf16 %v325_v63, %v324_v62  ;;  %1655 = vmatpush3.bf16.msra.mxu0 %v335_v50  ;;  %1741 = vmatpush3.bf16.msra.mxu1 %v335_v50  ;;  %v1776_v50 = vld [vmem:[%s2493_s3 + $0x38] sm:$0xff]   ;;  %v1788_v62 = vld [vmem:[%s2493_s3 + $0xd0] sm:$0xff]  }
  0xee   :  { %v1646_v5 = vpop.f32.mrb[8].mxu0  ;;  %v336_v6 = vpack.c.bf16 %v323_v4, %v322_v2  ;;  %v1789_v63 = vld [vmem:[%s2493_s3 + $0xd8] sm:$0xff]   ;;  %v2234_v2 = vpop.permute.xlu0 %552  ;;  %v1792_v4 = vld [vmem:[%s2493_s3 + $0xf0] sm:$0xff]  }
  0xef   :  { %v296_v7 = vadd.f32 %v1646_v5, %v117_v60  ;;  %v287_v8 = vpop.f32.mrb[9].mxu0  ;;  %v1786_v60 = vld [vmem:[%s2493_s3 + $0xc0] sm:$0xff]  }
  0xf0   :  { %v1647_v10 = vpop.f32.mrb[10].mxu0  ;;  %v288_v11 = vadd.f32 %v287_v8, %v107_v48  ;;  %1656 = vmatprep.subr.bf16.mxu0 %v336_v6  ;;  %1734 = vmatprep.subr.bf16.mxu1 %v336_v6  ;;  %v1774_v48 = vld [vmem:[%s2493_s3 + $0x30] sm:$0xff]  }
  0xf1   :  { %v299_v12 = vadd.f32 %v1647_v10, %v122_v1  ;;  %v290_v14 = vpop.f32.mrb[11].mxu0  ;;  %1657 = vmatpush3.bf16.msra.mxu0 %v336_v6  ;;  %1742 = vmatpush3.bf16.msra.mxu1 %v336_v6  ;;  %v328_v15 = vmax.f32 %v296_v7, 0.0  ;;  %v2232_v1 = vpop.permute.xlu1 %557  ;;  %v1793_v7 = vld [vmem:[%s2493_s3 + $0xf8] sm:$0xff]  }
  0xf2   :  { %v291_v17 = vadd.f32 %v290_v14, %v112_v52  ;;  %1658 = vmatprep.subr.bf16.mxu0 %v337_v3  ;;  %1735 = vmatprep.subr.bf16.mxu1 %v337_v3  ;;  %v326_v18 = vmax.f32 %v288_v11, 0.0  ;;  %v1778_v52 = vld [vmem:[%s2493_s3 + $0x40] sm:$0xff]   ;;  %v473_v6 = vpop.permute.xlu0 %472 }
  0xf3   :  { %v329_v16 = vmax.f32 %v299_v12, 0.0 }
  0xf4   :  { %v327_v20 = vmax.f32 %v291_v17, 0.0 }
  0xf5   :  { %v339_v19 = vpack.c.bf16 %v329_v16, %v328_v15  ;;  %1659 = vmatpush3.bf16.msra.mxu0 %v337_v3  ;;  %1743 = vmatpush3.bf16.msra.mxu1 %v337_v3  ;;  %v1791_v3 = vld [vmem:[%s2493_s3 + $0xe8] sm:$0xff]   ;;  %v2242_v5 = vpop.permute.xlu1 %477 }
  0xf6   :  { %v1650_v22 = vpop.f32.mrb[12].mxu0  ;;  %v338_v23 = vpack.c.bf16 %v327_v20, %v326_v18 }
  0xf7   :  { %v312_v24 = vadd.f32 %v1650_v22, %v137_v21  ;;  %v303_v25 = vpop.f32.mrb[13].mxu0 }
  0xf8   :  { %v1651_v27 = vpop.f32.mrb[14].mxu0  ;;  %v304_v28 = vadd.f32 %v303_v25, %v127_v9  ;;  %1660 = vmatprep.subr.bf16.mxu0 %v338_v23  ;;  %1736 = vmatprep.subr.bf16.mxu1 %v338_v23  ;;  %v2249_v9 = vpop.permute.xlu0 %562 }
  0xf9   :  { %v315_v29 = vadd.f32 %v1651_v27, %v142_v26  ;;  %v306_v30 = vpop.f32.mrb[15].mxu0  ;;  %1661 = vmatpush3.bf16.msra.mxu0 %v338_v23  ;;  %1744 = vmatpush3.bf16.msra.mxu1 %v338_v23  ;;  %v332_v31 = vmax.f32 %v312_v24, 0.0  ;;  %v2247_v8 = vpop.permute.xlu1 %567 }
  0xfa   :  { %v307_v33 = vadd.f32 %v306_v30, %v132_v13  ;;  %1662 = vmatprep.subr.bf16.mxu0 %v339_v19  ;;  %1737 = vmatprep.subr.bf16.mxu1 %v339_v19  ;;  %v330_v34 = vmax.f32 %v304_v28, 0.0 }
  0xfb   :  { %v333_v32 = vmax.f32 %v315_v29, 0.0 }
  0xfc   :  { %v331_v36 = vmax.f32 %v307_v33, 0.0  ;;  %v483_v11 = vpop.permute.xlu0 %482 }
  0xfd   :  { %v341_v35 = vpack.c.bf16 %v333_v32, %v332_v31  ;;  %1663 = vmatpush3.bf16.msra.mxu0 %v339_v19  ;;  %1745 = vmatpush3.bf16.msra.mxu1 %v339_v19  ;;  %v488_v10 = vpop.permute.xlu1 %487 }
  0xfe   :  { %v340_v37 = vpack.c.bf16 %v331_v36, %v330_v34  ;;  %v2290_v34 = vld [vmem:[%s2495_s5] sm:$0xff] }
  0xff   :  { %2499 = vst [vmem:[#allocation5_spill] sm:$0xff] %v2290_v34 }
 0x100   :  { %1664 = vmatprep.subr.bf16.mxu0 %v340_v37  ;;  %1738 = vmatprep.subr.bf16.mxu1 %v340_v37  ;;  %v573_v13 = vpop.permute.xlu0 %572 }
 0x101   :  { %1665 = vmatpush3.bf16.msra.mxu0 %v340_v37  ;;  %1746 = vmatpush3.bf16.msra.mxu1 %v340_v37  ;;  %v578_v12 = vpop.permute.xlu1 %577 }
 0x102   :  { %1666 = vmatprep.subr.bf16.mxu0 %v341_v35  ;;  %1739 = vmatprep.subr.bf16.mxu1 %v341_v35 }
 0x104   :  { %v2253_v15 = vpop.permute.xlu0 %492 }
 0x105   :  { %1667 = vmatpush3.bf16.msra.mxu0 %v341_v35  ;;  %1747 = vmatpush3.bf16.msra.mxu1 %v341_v35  ;;  %v2251_v14 = vpop.permute.xlu1 %497  ;;  %v1535_v35 = vcombine.high %v2290_v34, %v2290_v34 }
 0x108   :  { %1669 = vmatmul.mubr.bf16.vlgmr.msra.gmra.mrb[16].mxu0 %v1764_v38  ;;  %1689 = vmatmul.mubr.bf16.vlgmr.msra.gmra.mrb[0].mxu1 %v1765_v39  ;;  %v583_v17 = vpop.permute.xlu0 %582 }
 0x109   :  { %1672 = vmatprep.mubr.bf16.mxu0 %v1766_v40  ;;  %1692 = vmatprep.mubr.bf16.mxu1 %v1767_v41  ;;  %v588_v16 = vpop.permute.xlu1 %587 }
 0x10c   :  { %v2257_v19 = vpop.permute.xlu0 %502 }
 0x10d   :  { %v2255_v18 = vpop.permute.xlu1 %507 }
 0x110   :  { %1673 = vmatmul.mubr.bf16.gmra.mrb[20].mxu0 %v1768_v42  ;;  %1693 = vmatmul.mubr.bf16.gmra.mrb[4].mxu1 %v1769_v43  ;;  %v2261_v21 = vpop.permute.xlu0 %592 }
 0x111   :  { %1676 = vmatprep.mubr.bf16.mxu0 %v1770_v44  ;;  %1696 = vmatprep.mubr.bf16.mxu1 %v1771_v45  ;;  %v2259_v20 = vpop.permute.xlu1 %597 }
 0x114   :  { %v2265_v23 = vpop.permute.xlu0 %512 }
 0x115   :  { %v2263_v22 = vpop.permute.xlu1 %517 }
 0x118   :  { %1677 = vmatmul.mubr.bf16.gmra.mrb[24].mxu0 %v1772_v46  ;;  %1697 = vmatmul.mubr.bf16.gmra.mrb[8].mxu1 %v1773_v47  ;;  %v2269_v25 = vpop.permute.xlu0 %602 }
 0x119   :  { %1680 = vmatprep.mubr.bf16.mxu0 %v1774_v48  ;;  %1700 = vmatprep.mubr.bf16.mxu1 %v1775_v49  ;;  %v2267_v24 = vpop.permute.xlu1 %607 }
 0x11c   :  { %v2273_v27 = vpop.permute.xlu0 %522 }
 0x11d   :  { %v2271_v26 = vpop.permute.xlu1 %527 }
 0x120   :  { %1681 = vmatmul.mubr.bf16.gmra.mrb[28].mxu0 %v1776_v50  ;;  %1701 = vmatmul.mubr.bf16.gmra.mrb[12].mxu1 %v1777_v51  ;;  %v2277_v29 = vpop.permute.xlu0 %612 }
 0x121   :  { %1684 = vmatprep.mubr.bf16.mxu0 %v1778_v52  ;;  %1704 = vmatprep.mubr.bf16.mxu1 %v1779_v53  ;;  %v2275_v28 = vpop.permute.xlu1 %617 }
 0x124   :  { %v2281_v31 = vpop.permute.xlu0 %532 }
 0x125   :  { %v2279_v30 = vpop.permute.xlu1 %537 }
 0x128   :  { %1685 = vmatmul.mubr.bf16.gmra.mrb[32].mxu0 %v1780_v54  ;;  %1705 = vmatmul.mubr.bf16.gmra.mrb[16].mxu1 %v1781_v55  ;;  %v2285_v33 = vpop.permute.xlu0 %622 }
 0x129   :  { %1708 = vmatprep.mubr.bf16.mxu1 %v1782_v56  ;;  %v2283_v32 = vpop.permute.xlu1 %627  ;;  %1421 = vmatprep.mubr.bf16.mxu0 %v1535_v35 }
 0x12c   :  { %v2296_v37 = vpop.permute.xlu0 %542 }
 0x12d   :  { %v2294_v36 = vpop.permute.xlu1 %547 }
 0x130   :  { %1709 = vmatmul.mubr.bf16.gmra.mrb[20].mxu1 %v1783_v57  ;;  %v2300_v39 = vpop.permute.xlu0 %712 }
 0x131   :  { %1712 = vmatprep.mubr.bf16.mxu1 %v1784_v58  ;;  %v2298_v38 = vpop.permute.xlu1 %717 }
 0x132   :  { %2500 = vst [vmem:[#allocation6_spill] sm:$0xff] %v2298_v38 }
 0x134   :  { %v2304_v41 = vpop.permute.xlu0 %632 }
 0x135   :  { %v2302_v40 = vpop.permute.xlu1 %637 }
 0x138   :  { %1713 = vmatmul.mubr.bf16.gmra.mrb[24].mxu1 %v1785_v59  ;;  %v2308_v43 = vpop.permute.xlu0 %722 }
 0x139   :  { %1716 = vmatprep.mubr.bf16.mxu1 %v1786_v60  ;;  %v2306_v42 = vpop.permute.xlu1 %727 }
 0x13c   :  { %v2312_v45 = vpop.permute.xlu0 %642 }
 0x13d   :  { %v2310_v44 = vpop.permute.xlu1 %647 }
 0x140   :  { %1717 = vmatmul.mubr.bf16.gmra.mrb[28].mxu1 %v1787_v61  ;;  %v2316_v47 = vpop.permute.xlu0 %732 }
 0x141   :  { %1720 = vmatprep.mubr.bf16.mxu1 %v1788_v62  ;;  %v2314_v46 = vpop.permute.xlu1 %737  ;;  %2502 = vst [vmem:[#allocation8_spill] sm:$0xff] %v2316_v47 }
 0x142   :  { %2501 = vst [vmem:[#allocation7_spill] sm:$0xff] %v2314_v46 }
 0x144   :  { %v2320_v49 = vpop.permute.xlu0 %652 }
 0x145   :  { %v2318_v48 = vpop.permute.xlu1 %657 }
 0x148   :  { %1721 = vmatmul.mubr.bf16.gmra.mrb[32].mxu1 %v1789_v63  ;;  %v2324_v51 = vpop.permute.xlu0 %742 }
 0x149   :  { %1724 = vmatprep.mubr.bf16.mxu1 %v1790_v0  ;;  %v2322_v50 = vpop.permute.xlu1 %747  ;;  %2504 = vst [vmem:[#allocation10_spill] sm:$0xff] %v2324_v51 }
 0x14a   :  { %2503 = vst [vmem:[#allocation9_spill] sm:$0xff] %v2322_v50 }
 0x14c   :  { %v2328_v53 = vpop.permute.xlu0 %662 }
 0x14d   :  { %v2326_v52 = vpop.permute.xlu1 %667 }
 0x150   :  { %1725 = vmatmul.mubr.bf16.gmra.mrb[36].mxu1 %v1791_v3  ;;  %v2332_v55 = vpop.permute.xlu0 %752 }
 0x151   :  { %1728 = vmatprep.mubr.bf16.mxu1 %v1792_v4  ;;  %v2330_v54 = vpop.permute.xlu1 %757  ;;  %2506 = vst [vmem:[#allocation12_spill] sm:$0xff] %v2332_v55 }
 0x152   :  { %2505 = vst [vmem:[#allocation11_spill] sm:$0xff] %v2330_v54 }
 0x158   :  { %1729 = vmatmul.mubr.bf16.gmra.mrb[40].mxu1 %v1793_v7 }
 0x1db   :  { %v1670_v56 = vpop.f32.mrb[16].mxu0  ;;  %v1690_v57 = vpop.f32.mrb[0].mxu1 }
 0x1dc   :  { %v1025_v58 = vadd.f32 %v1670_v56, %v483_v11  ;;  %v1105_v59 = vadd.f32 %v1690_v57, %v583_v17  ;;  %v1016_v60 = vpop.f32.mrb[17].mxu0  ;;  %v1096_v61 = vpop.f32.mrb[1].mxu1 }
 0x1dd   :  { %v1017_v62 = vadd.f32 %v1016_v60, %v473_v6  ;;  %v1097_v63 = vadd.f32 %v1096_v61, %v573_v13  ;;  %v1671_v0 = vpop.f32.mrb[18].mxu0  ;;  %v1691_v3 = vpop.f32.mrb[2].mxu1 }
 0x1de   :  { %v1028_v4 = vadd.f32 %v1671_v0, %v488_v10  ;;  %v1108_v7 = vadd.f32 %v1691_v3, %v588_v16  ;;  %v1019_v35 = vpop.f32.mrb[19].mxu0  ;;  %v1099_v34 = vpop.f32.mrb[3].mxu1  ;;  %v1273_v54 = vmax.f32 %v1025_v58, 0.0  ;;  %v1293_v47 = vmax.f32 %v1105_v59, 0.0 }
 0x1df   :  { %v1020_v46 = vadd.f32 %v1019_v35, %v2242_v5  ;;  %v1100_v50 = vadd.f32 %v1099_v34, %v578_v12  ;;  %v1271_v38 = vmax.f32 %v1017_v62, 0.0  ;;  %v1291_v11 = vmax.f32 %v1097_v63, 0.0  ;;  %v2335_v57 = vpop.permute.xlu1 %677  ;;  %v2337_v6 = vpop.permute.xlu0 %672 }
 0x1e0   :  { %v1274_v55 = vmax.f32 %v1028_v4, 0.0  ;;  %v1294_v51 = vmax.f32 %v1108_v7, 0.0 }
 0x1e1   :  { %v1272_v17 = vmax.f32 %v1020_v46, 0.0  ;;  %v1292_v56 = vmax.f32 %v1100_v50, 0.0 }
 0x1e2   :  { %v2339_v13 = vpack.c.bf16 %v1274_v55, %v1273_v54  ;;  %v2341_v10 = vpack.c.bf16 %v1294_v51, %v1293_v47 }
 0x1e3   :  { %v2343_v16 = vpack.c.bf16 %v1272_v17, %v1271_v38  ;;  %v2345_v5 = vpack.c.bf16 %v1292_v56, %v1291_v11  ;;  %v1674_v12 = vpop.f32.mrb[20].mxu0  ;;  %v1694_v34 = vpop.f32.mrb[4].mxu1 }
 0x1e4   :  { %v1041_v58 = vadd.f32 %v1674_v12, %v2257_v19  ;;  %v1121_v59 = vadd.f32 %v1694_v34, %v2269_v25  ;;  %v1032_v46 = vpop.f32.mrb[21].mxu0  ;;  %v1112_v50 = vpop.f32.mrb[5].mxu1 }
 0x1e5   :  { %v1033_v60 = vadd.f32 %v1032_v46, %v2253_v15  ;;  %v1113_v61 = vadd.f32 %v1112_v50, %v2261_v21  ;;  %v1675_v54 = vpop.f32.mrb[22].mxu0  ;;  %v1695_v55 = vpop.f32.mrb[6].mxu1 }
 0x1e6   :  { %v1044_v47 = vadd.f32 %v1675_v54, %v2255_v18  ;;  %v1124_v38 = vadd.f32 %v1695_v55, %v2267_v24  ;;  %v1035_v51 = vpop.f32.mrb[23].mxu0  ;;  %v1115_v62 = vpop.f32.mrb[7].mxu1  ;;  %v1277_v0 = vmax.f32 %v1041_v58, 0.0  ;;  %v1297_v25 = vmax.f32 %v1121_v59, 0.0 }
 0x1e7   :  { %v1036_v63 = vadd.f32 %v1035_v51, %v2251_v14  ;;  %v1116_v19 = vadd.f32 %v1115_v62, %v2259_v20  ;;  %v1275_v7 = vmax.f32 %v1033_v60, 0.0  ;;  %v1295_v15 = vmax.f32 %v1113_v61, 0.0  ;;  %v2355_v11 = vpop.permute.xlu1 %767  ;;  %v2357_v17 = vpop.permute.xlu0 %762 }
 0x1e8   :  { %v1278_v3 = vmax.f32 %v1044_v47, 0.0  ;;  %v1298_v4 = vmax.f32 %v1124_v38, 0.0 }
 0x1e9   :  { %v1276_v35 = vmax.f32 %v1036_v63, 0.0  ;;  %v1296_v21 = vmax.f32 %v1116_v19, 0.0 }
 0x1ea   :  { %v2359_v18 = vpack.c.bf16 %v1278_v3, %v1277_v0  ;;  %v2361_v24 = vpack.c.bf16 %v1298_v4, %v1297_v25 }
 0x1eb   :  { %v2363_v56 = vpack.c.bf16 %v1276_v35, %v1275_v7  ;;  %v2365_v14 = vpack.c.bf16 %v1296_v21, %v1295_v15  ;;  %v1678_v20 = vpop.f32.mrb[24].mxu0  ;;  %v1698_v12 = vpop.f32.mrb[8].mxu1 }
 0x1ec   :  { %v1057_v34 = vadd.f32 %v1678_v20, %v2273_v27  ;;  %v1137_v58 = vadd.f32 %v1698_v12, %v2285_v33  ;;  %v1048_v59 = vpop.f32.mrb[25].mxu0  ;;  %v1128_v46 = vpop.f32.mrb[9].mxu1 }
 0x1ed   :  { %v1049_v50 = vadd.f32 %v1048_v59, %v2265_v23  ;;  %v1129_v60 = vadd.f32 %v1128_v46, %v2277_v29  ;;  %v1679_v61 = vpop.f32.mrb[26].mxu0  ;;  %v1699_v54 = vpop.f32.mrb[10].mxu1 }
 0x1ee   :  { %v1060_v55 = vadd.f32 %v1679_v61, %v2271_v26  ;;  %v1140_v47 = vadd.f32 %v1699_v54, %v2283_v32  ;;  %v1051_v38 = vpop.f32.mrb[27].mxu0  ;;  %v1131_v51 = vpop.f32.mrb[11].mxu1  ;;  %v1281_v63 = vmax.f32 %v1057_v34, 0.0  ;;  %v1301_v33 = vmax.f32 %v1137_v58, 0.0 }
 0x1ef   :  { %v1052_v62 = vadd.f32 %v1051_v38, %v2263_v22  ;;  %v1132_v27 = vadd.f32 %v1131_v51, %v2275_v28  ;;  %v1279_v25 = vmax.f32 %v1049_v50, 0.0  ;;  %v1299_v23 = vmax.f32 %v1129_v60, 0.0  ;;  %v2375_v4 = vpop.permute.xlu1 %687  ;;  %v2377_v7 = vpop.permute.xlu0 %682 }
 0x1f0   :  { %v1282_v19 = vmax.f32 %v1060_v55, 0.0  ;;  %v1302_v0 = vmax.f32 %v1140_v47, 0.0 }
 0x1f1   :  { %v1280_v3 = vmax.f32 %v1052_v62, 0.0  ;;  %v1300_v29 = vmax.f32 %v1132_v27, 0.0 }
 0x1f2   :  { %v2379_v26 = vpack.c.bf16 %v1282_v19, %v1281_v63  ;;  %v2381_v32 = vpack.c.bf16 %v1302_v0, %v1301_v33 }
 0x1f3   :  { %v2383_v15 = vpack.c.bf16 %v1280_v3, %v1279_v25  ;;  %v2385_v22 = vpack.c.bf16 %v1300_v29, %v1299_v23  ;;  %v1682_v28 = vpop.f32.mrb[28].mxu0  ;;  %v1702_v35 = vpop.f32.mrb[12].mxu1 }
 0x1f4   :  { %v1073_v21 = vadd.f32 %v1682_v28, %v2296_v37  ;;  %v1153_v20 = vadd.f32 %v1702_v35, %v2312_v45  ;;  %v1064_v12 = vpop.f32.mrb[29].mxu0  ;;  %v1144_v34 = vpop.f32.mrb[13].mxu1 }
 0x1f5   :  { %v1065_v58 = vadd.f32 %v1064_v12, %v2281_v31  ;;  %v1145_v59 = vadd.f32 %v1144_v34, %v2304_v41  ;;  %v1683_v46 = vpop.f32.mrb[30].mxu0  ;;  %v1703_v50 = vpop.f32.mrb[14].mxu1 }
 0x1f6   :  { %v1076_v60 = vadd.f32 %v1683_v46, %v2294_v36  ;;  %v1156_v61 = vadd.f32 %v1703_v50, %v2310_v44  ;;  %v1067_v54 = vpop.f32.mrb[31].mxu0  ;;  %v1147_v55 = vpop.f32.mrb[15].mxu1  ;;  %v1285_v38 = vmax.f32 %v1073_v21, 0.0  ;;  %v1305_v45 = vmax.f32 %v1153_v20, 0.0 }
 0x1f7   :  { %v1068_v47 = vadd.f32 %v1067_v54, %v2279_v30  ;;  %v1148_v37 = vadd.f32 %v1147_v55, %v2302_v40  ;;  %v2395_v27 = vpop.permute.xlu0 %772  ;;  %v1283_v31 = vmax.f32 %v1065_v58, 0.0  ;;  %v1303_v41 = vmax.f32 %v1145_v59, 0.0  ;;  %v2397_v19 = vpop.permute.xlu1 %777 }
 0x1f8   :  { %v1286_v51 = vmax.f32 %v1076_v60, 0.0  ;;  %v1306_v62 = vmax.f32 %v1156_v61, 0.0 }
 0x1f9   :  { %v1284_v63 = vmax.f32 %v1068_v47, 0.0  ;;  %v1304_v33 = vmax.f32 %v1148_v37, 0.0 }
 0x1fa   :  { %v2399_v36 = vpack.c.bf16 %v1286_v51, %v1285_v38  ;;  %v2401_v44 = vpack.c.bf16 %v1306_v62, %v1305_v45 }
 0x1fb   :  { %v2403_v0 = vpack.c.bf16 %v1284_v63, %v1283_v31  ;;  %v2405_v30 = vpack.c.bf16 %v1304_v33, %v1303_v41  ;;  %v1686_v40 = vpop.f32.mrb[32].mxu0  ;;  %v1706_v25 = vpop.f32.mrb[16].mxu1 }
 0x1fc   :  { %v1089_v23 = vadd.f32 %v1686_v40, %v2249_v9  ;;  %v1169_v3 = vadd.f32 %v1706_v25, %v2328_v53  ;;  %v1080_v29 = vpop.f32.mrb[33].mxu0  ;;  %v1160_v28 = vpop.f32.mrb[17].mxu1 }
 0x1fd   :  { %v1081_v35 = vadd.f32 %v1080_v29, %v2234_v2  ;;  %v1161_v21 = vadd.f32 %v1160_v28, %v2320_v49  ;;  %v1687_v20 = vpop.f32.mrb[34].mxu0  ;;  %v1707_v12 = vpop.f32.mrb[18].mxu1 }
 0x1fe   :  { %v1092_v34 = vadd.f32 %v1687_v20, %v2247_v8  ;;  %v1172_v58 = vadd.f32 %v1707_v12, %v2326_v52  ;;  %v1083_v59 = vpop.f32.mrb[35].mxu0  ;;  %v1163_v46 = vpop.f32.mrb[19].mxu1  ;;  %v1289_v53 = vmax.f32 %v1089_v23, 0.0  ;;  %v1309_v61 = vmax.f32 %v1169_v3, 0.0 }
 0x1ff   :  { %v693_v50 = vpop.permute.xlu0 %692  ;;  %v1084_v60 = vadd.f32 %v1083_v59, %v2232_v1  ;;  %v1164_v9 = vadd.f32 %v1163_v46, %v2318_v48  ;;  %v698_v2 = vpop.permute.xlu1 %697  ;;  %v1287_v47 = vmax.f32 %v1081_v35, 0.0  ;;  %v1307_v49 = vmax.f32 %v1161_v21, 0.0 }
 0x200   :  { %v1290_v54 = vmax.f32 %v1092_v34, 0.0  ;;  %v1310_v55 = vmax.f32 %v1172_v58, 0.0 }
 0x201   :  { %v1288_v37 = vmax.f32 %v1084_v60, 0.0  ;;  %v1308_v38 = vmax.f32 %v1164_v9, 0.0 }
 0x202   :  { %v1344_v45 = vpack.c.bf16 %v1290_v54, %v1289_v53  ;;  %v2415_v8 = vpack.c.bf16 %v1310_v55, %v1309_v61 }
 0x203   :  { %v1343_v52 = vpack.c.bf16 %v1288_v37, %v1287_v47  ;;  %v2417_v51 = vpack.c.bf16 %v1308_v38, %v1307_v49  ;;  %v1710_v62 = vpop.f32.mrb[20].mxu1  ;;  %v2420_v48 = vpop.permute.xlu0 %782  ;;  %v2507_v49 = vld [vmem:[#allocation6_spill] sm:$0xff] }
 0x204   :  { %v1185_v1 = vadd.f32 %v1710_v62, %v2377_v7  ;;  %v1176_v31 = vpop.f32.mrb[21].mxu1  ;;  %v2425_v25 = vpop.permute.xlu1 %787 }
 0x205   :  { %v1177_v41 = vadd.f32 %v1176_v31, %v2337_v6  ;;  %v1711_v63 = vpop.f32.mrb[22].mxu1  ;;  %1588 = vmatprep.subr.bf16.mxu0 %v1343_v52  ;;  %v2509_v31 = vld [vmem:[#allocation8_spill] sm:$0xff] }
 0x206   :  { %v1188_v33 = vadd.f32 %v1711_v63, %v2375_v4  ;;  %v1179_v40 = vpop.f32.mrb[23].mxu1  ;;  %1589 = vmatpush3.bf16.msra.mxu0 %v2343_v16  ;;  %v1313_v3 = vmax.f32 %v1185_v1, 0.0  ;;  %v2510_v63 = vld [vmem:[#allocation9_spill] sm:$0xff] }
 0x207   :  { %v1180_v23 = vadd.f32 %v1179_v40, %v2335_v57  ;;  %1590 = vmatprep.subr.bf16.mxu0 %v1344_v45  ;;  %v1311_v7 = vmax.f32 %v1177_v41, 0.0  ;;  %v703_v6 = vpop.permute.xlu0 %702  ;;  %v2511_v40 = vld [vmem:[#allocation7_spill] sm:$0xff] }
 0x208   :  { %v1314_v29 = vmax.f32 %v1188_v33, 0.0  ;;  %v708_v12 = vpop.permute.xlu1 %707 }
 0x209   :  { %v1312_v28 = vmax.f32 %v1180_v23, 0.0 }
 0x20a   :  { %v2428_v35 = vpack.c.bf16 %v1314_v29, %v1313_v3  ;;  %1591 = vmatpush3.bf16.msra.mxu0 %v2339_v13 }
 0x20b   :  { %v2431_v21 = vpack.c.bf16 %v1312_v28, %v1311_v7  ;;  %v1714_v4 = vpop.f32.mrb[24].mxu1  ;;  %1592 = vmatprep.subr.bf16.mxu0 %v2345_v5  ;;  %v2512_v28 = vld [vmem:[#allocation5_spill] sm:$0xff] }
 0x20c   :  { %v1201_v16 = vadd.f32 %v1714_v4, %v703_v6  ;;  %v1192_v20 = vpop.f32.mrb[25].mxu1  ;;  %v1534_v6 = vcombine.low %v2512_v28, %v2512_v28 }
 0x20d   :  { %v1193_v34 = vadd.f32 %v1192_v20, %v693_v50  ;;  %v1715_v57 = vpop.f32.mrb[26].mxu1 }
 0x20e   :  { %v1204_v58 = vadd.f32 %v1715_v57, %v708_v12  ;;  %v1195_v59 = vpop.f32.mrb[27].mxu1  ;;  %1593 = vmatpush3.bf16.msra.mxu0 %v2363_v56  ;;  %v1317_v60 = vmax.f32 %v1201_v16, 0.0 }
 0x20f   :  { %v1196_v46 = vadd.f32 %v1195_v59, %v698_v2  ;;  %1594 = vmatprep.subr.bf16.mxu0 %v2341_v10  ;;  %v1315_v9 = vmax.f32 %v1193_v34, 0.0  ;;  %v2513_v34 = vld [vmem:[#allocation12_spill] sm:$0xff] }
 0x210   :  { %v1318_v13 = vmax.f32 %v1204_v58, 0.0 }
 0x211   :  { %v1316_v53 = vmax.f32 %v1196_v46, 0.0 }
 0x212   :  { %v2436_v61 = vpack.c.bf16 %v1318_v13, %v1317_v60  ;;  %1595 = vmatpush3.bf16.msra.mxu0 %v2359_v18  ;;  %v2514_v60 = vld [vmem:[#allocation11_spill] sm:$0xff] }
 0x213   :  { %v2439_v5 = vpack.c.bf16 %v1316_v53, %v1315_v9  ;;  %v1718_v54 = vpop.f32.mrb[28].mxu1  ;;  %1596 = vmatprep.subr.bf16.mxu0 %v2365_v14 }
 0x214   :  { %v1217_v50 = vadd.f32 %v1718_v54, %v2308_v43  ;;  %v1208_v55 = vpop.f32.mrb[29].mxu1 }
 0x215   :  { %v1209_v56 = vadd.f32 %v1208_v55, %v2300_v39  ;;  %v1719_v2 = vpop.f32.mrb[30].mxu1  ;;  %v2508_v39 = vld [vmem:[#allocation10_spill] sm:$0xff] }
 0x216   :  { %v1220_v10 = vadd.f32 %v1719_v2, %v2306_v42  ;;  %v1211_v47 = vpop.f32.mrb[31].mxu1  ;;  %1597 = vmatpush3.bf16.msra.mxu0 %v2383_v15  ;;  %v1321_v18 = vmax.f32 %v1217_v50, 0.0 }
 0x217   :  { %v1212_v37 = vadd.f32 %v1211_v47, %v2507_v49  ;;  %1598 = vmatprep.subr.bf16.mxu0 %v2361_v24  ;;  %v1319_v45 = vmax.f32 %v1209_v56, 0.0 }
 0x218   :  { %v1322_v38 = vmax.f32 %v1220_v10, 0.0 }
 0x219   :  { %v1320_v52 = vmax.f32 %v1212_v37, 0.0 }
 0x21a   :  { %v1360_v14 = vpack.c.bf16 %v1322_v38, %v1321_v18  ;;  %1599 = vmatpush3.bf16.msra.mxu0 %v2379_v26  ;;  %v1368_v26 = vld [vmem:[%s2495_s5 + $0x8] sm:$0xff]  ;;  %s1823_s5 = smov [#allocation2]  }
 0x21b   :  { %v1359_v43 = vpack.c.bf16 %v1320_v52, %v1319_v45  ;;  %v1722_v62 = vpop.f32.mrb[32].mxu1  ;;  %1600 = vmatprep.subr.bf16.mxu0 %v2385_v22  ;;  %v1537_v16 = vcombine.high %v1368_v26, %v1368_v26  ;;  %s1476_s13 = sshll.u32 %s1823_s5, 4  ;;  %s1477_s13 = int_to_ptr.vmem [resolvable:$true] %s1476_s13 }
 0x21c   :  { %v1233_v42 = vadd.f32 %v1722_v62, %v2508_v39  ;;  %v1224_v1 = vpop.f32.mrb[33].mxu1  ;;  %s1798_s14 = scalar_lea.vmem %s1477_s13, 128  ;;  %p1803_p1 = scmp.lt.s32.totalorder %s1477_s13, %s1477_s13 }
 0x21d   :  { %v1225_v15 = vadd.f32 %v1224_v1, %v2509_v31  ;;  %v1723_v41 = vpop.f32.mrb[34].mxu1  ;;  %p1799_p0 = scmp.ne.s32.totalorder %s1477_s13, %s1798_s14  ;;  %p1804_p2 = scmp.lt.s32.totalorder %s1798_s14, %s1798_s14 }
 0x21e   :  { %v1236_v33 = vadd.f32 %v1723_v41, %v2510_v63  ;;  %v1227_v24 = vpop.f32.mrb[35].mxu1  ;;  %1601 = vmatpush3.bf16.msra.mxu0 %v2403_v0  ;;  %v1325_v22 = vmax.f32 %v1233_v42, 0.0 }
 0x21f   :  { %v1228_v23 = vadd.f32 %v1227_v24, %v2511_v40  ;;  %1602 = vmatprep.subr.bf16.mxu0 %v2381_v32  ;;  %v1323_v29 = vmax.f32 %v1225_v15, 0.0  ;;  %p1805_p3 = por %p1804_p2, %p1803_p1 }
 0x220   :  { %v1326_v3 = vmax.f32 %v1236_v33, 0.0 }
 0x221   :  { %v1324_v7 = vmax.f32 %v1228_v23, 0.0  ;;  %p1806_p4 = pnand %p1805_p3, %p1799_p0 }
 0x222   :  { %v1362_v4 = vpack.c.bf16 %v1326_v3, %v1325_v22  ;;  %1603 = vmatpush3.bf16.msra.mxu0 %v2399_v36 }
 0x223   :  { %v1361_v0 = vpack.c.bf16 %v1324_v7, %v1323_v29  ;;  %v1726_v20 = vpop.f32.mrb[36].mxu1  ;;  %1610 = vmatprep.subr.bf16.mxu0 %v1359_v43  ;;  %v1373_v43 = vpop.permute.xlu0 %1372 }
 0x224   :  { %v1249_v32 = vadd.f32 %v1726_v20, %v2357_v17  ;;  %v1240_v12 = vpop.f32.mrb[37].mxu1 }
 0x225   :  { %v1241_v57 = vadd.f32 %v1240_v12, %v2513_v34  ;;  %v1727_v58 = vpop.f32.mrb[38].mxu1  ;;  %1422 = vmatmul.mubr.bf16.vlgmr.msra.gmra.mrb[36].mxu0 %v1534_v6 }
 0x226   :  { %v1252_v59 = vadd.f32 %v1727_v58, %v2355_v11  ;;  %v1243_v46 = vpop.f32.mrb[39].mxu1  ;;  %1611 = vmatpush3.bf16.msra.mxu0 %v2405_v30  ;;  %1461 = vmatprep.mubr.bf16.mxu0 %v1537_v16  ;;  %v1329_v36 = vmax.f32 %v1249_v32, 0.0 }
 0x227   :  { %v1244_v13 = vadd.f32 %v1243_v46, %v2514_v60  ;;  %1612 = vmatprep.subr.bf16.mxu0 %v1360_v14  ;;  %v1327_v53 = vmax.f32 %v1241_v57, 0.0 }
 0x228   :  { %v1330_v9 = vmax.f32 %v1252_v59, 0.0 }
 0x229   :  { %v1328_v54 = vmax.f32 %v1244_v13, 0.0 }
 0x22a   :  { %v1364_v50 = vpack.c.bf16 %v1330_v9, %v1329_v36  ;;  %1613 = vmatpush3.bf16.msra.mxu0 %v2401_v44 }
 0x22b   :  { %v1363_v17 = vpack.c.bf16 %v1328_v54, %v1327_v53  ;;  %v1730_v55 = vpop.f32.mrb[40].mxu1  ;;  %1614 = vmatprep.subr.bf16.mxu0 %v1361_v0 }
 0x22c   :  { %v1265_v56 = vadd.f32 %v1730_v55, %v2420_v48  ;;  %v1256_v11 = vpop.f32.mrb[41].mxu1 }
 0x22d   :  { %v1257_v2 = vadd.f32 %v1256_v11, %v2395_v27  ;;  %v1731_v30 = vpop.f32.mrb[42].mxu1  ;;  %v1536_v27 = vcombine.low %v1368_v26, %v1368_v26 }
 0x22e   :  { %v1268_v10 = vadd.f32 %v1731_v30, %v2425_v25  ;;  %v1259_v47 = vpop.f32.mrb[43].mxu1  ;;  %1615 = vmatpush3.bf16.msra.mxu0 %v2417_v51  ;;  %v1333_v37 = vmax.f32 %v1265_v56, 0.0 }
 0x22f   :  { %v1260_v49 = vadd.f32 %v1259_v47, %v2397_v19  ;;  %1616 = vmatprep.subr.bf16.mxu0 %v1362_v4  ;;  %v1331_v44 = vmax.f32 %v1257_v2, 0.0 }
 0x230   :  { %v1334_v18 = vmax.f32 %v1268_v10, 0.0 }
 0x231   :  { %v1332_v38 = vmax.f32 %v1260_v49, 0.0 }
 0x232   :  { %v1366_v45 = vpack.c.bf16 %v1334_v18, %v1333_v37  ;;  %1617 = vmatpush3.bf16.msra.mxu0 %v2415_v8 }
 0x233   :  { %v1365_v48 = vpack.c.bf16 %v1332_v38, %v1331_v44  ;;  %1618 = vmatprep.subr.bf16.mxu0 %v1363_v17 }
 0x236   :  { %1619 = vmatpush3.bf16.msra.mxu0 %v2431_v21 }
 0x237   :  { %1620 = vmatprep.subr.bf16.mxu0 %v1364_v50 }
 0x23a   :  { %1621 = vmatpush3.bf16.msra.mxu0 %v2428_v35 }
 0x23b   :  { %1622 = vmatprep.subr.bf16.mxu0 %v1365_v48 }
 0x23e   :  { %1623 = vmatpush3.bf16.msra.mxu0 %v2439_v5 }
 0x23f   :  { %1624 = vmatprep.subr.bf16.mxu0 %v1366_v45 }
 0x242   :  { %1625 = vmatpush3.bf16.msra.mxu0 %v2436_v61 }
 0x245   :  { %1462 = vmatmul.mubr.bf16.vlgmr.msra.gmra.mrb[40].mxu0 %v1536_v27 }
 0x2f8   :  { %v1604_v19 = vpop.f32.mrb[36].mxu0 }
 0x2f9   :  { %v1605_v51 = vpop.f32.mrb[37].mxu0 }
 0x2fa   :  { %v1606_v25 = vadd.f32 %v1605_v51, %v1604_v19  ;;  %v1607_v52 = vpop.f32.mrb[38].mxu0 }
 0x2fb   :  { %v1608_v8 = vpop.f32.mrb[39].mxu0 }
 0x2fc   :  { %v1424_v21 = vadd.f32 %v1606_v25, %v1373_v43 }
 0x318   :  { %v1626_v14 = vpop.f32.mrb[40].mxu0 }
 0x319   :  { %v1627_v62 = vpop.f32.mrb[41].mxu0 }
 0x31a   :  { %v1628_v35 = vadd.f32 %v1627_v62, %v1626_v14  ;;  %v1629_v39 = vpop.f32.mrb[42].mxu0 }
 0x31b   :  { %v1630_v42 = vpop.f32.mrb[43].mxu0 }
 0x31c   :  { %v1464_v5 = vadd.f32 %v1628_v35, %v1424_v21 }
 0x31e   :  { %1469 = vst [vmem:[#allocation2] sm:$0xff] %v1464_v5 }
 0x31f   :  { %1809 = shalt.err (!%p1806_p4)
}
 0x320   :  { %s1810_s16 = scalar_lea.hbm %s2497_s7, 128 }
 0x321   :  { %p1811_p5 = scmp.ne.s32.totalorder %s2497_s7, %s1810_s16  ;;  %p1814_p6 = scmp.lt.u32.totalorder %s1810_s16, %s2497_s7 }
 0x323   :  { %p1816_p7 = pnand %p1814_p6, %p1811_p5 }
 0x325   :  { %1819 = shalt.err (!%p1816_p7)
}
 0x326   :  { %1479 = dma.vmem_to_hbm [thread:$0]  %s1477_s13, 128, %s2497_s7, [#allocation3]  }
 0x327   :  { %1820 = dma.done.wait [#allocation3], 128  }
 0x328   :  { %1821 = vsyncadd [#allocation3], 4294967168 }
 0x329   :  { %1483 = vsyncpa [#allocation3], 1 }

</bundles_post_ra>
